<compile_context>
chip_gen: v7x
topology: tpu7x:2x2x1
jax: 0.10.0
libtpu: 0.0.40
codegen_flags: <defaults>
</compile_context>

<pallas_src>
import functools

import jax
import jax.numpy as jnp
from jax.experimental import pallas as pl
from jax.experimental.pallas import tpu as pltpu


def _round_up(x, m):
    return ((x + m - 1) // m) * m


# SiLU tanh evaluated in bf16 (~2x EUP throughput on v6e/v7x; v5e extends to f32).
# Set to jnp.float32 if bit-tighter numerics are preferred on v5e.
_SILU_EUP_DTYPE = jnp.bfloat16


# ----------------------------- fused level kernel ---------------------------

def _level_kernel(x_ref, *refs, use_neck, TMp, g, M, fmp_w, NC, reg_max, stride, C_pack):
    """One pyramid level, one tile of TMp packed super-rows (g pixels each).

    Input refs: bb_w, bb_b, [neck_w, neck_b,] fpn_w, fpn_b, head_w, head_b,
                pred_w, pred_b, dfl_w, o_ref (last).
    Packed output columns (per super-row, group-major):
      [0 : g*4*reg_max)            reg logits (R4 per group)
      [g*4*reg_max : g*(R4+NC))    cls logits (NC per group)
      [g*(R4+NC) : g*(R4+NC+4))    decoded box (4 per group)
      then zero pad up to C_pack (multiple of 128 -> single unmasked store).
    """
    if use_neck:
        (bb_w, bb_b, neck_w, neck_b, fpn_w, fpn_b,
         head_w, head_b, pred_w, pred_b, dfl_w, o_ref) = refs
    else:
        (bb_w, bb_b, fpn_w, fpn_b,
         head_w, head_b, pred_w, pred_b, dfl_w, o_ref) = refs

    R4 = 4 * reg_max
    gR4 = g * R4
    g4 = g * 4
    cdt = x_ref.dtype  # bf16 MXU operand dtype

    def mm(a, w_ref_):
        return jnp.dot(a, w_ref_[...], preferred_element_type=jnp.float32)

    def silu(y):
        # y * sigmoid(y) == 0.5*y*(1 + tanh(0.5*y)) : one EUP transcendental per vreg.
        h = 0.5 * y
        t = jnp.tanh(h.astype(_SILU_EUP_DTYPE)).astype(jnp.float32)
        return h * (1.0 + t)

    x = x_ref[...]                                              # [TMp, g*Cin] bf16
    feat = silu(mm(x, bb_w) + bb_b[...])                        # [TMp, g*d]  f32
    if use_neck:
        feat = silu(mm(feat.astype(cdt), neck_w) + neck_b[...])
    feat = silu(mm(feat.astype(cdt), fpn_w) + fpn_b[...])
    head = silu(mm(feat.astype(cdt), head_w) + head_b[...])     # [TMp, g*2d] (cls|reg per group)
    preds = mm(head.astype(cdt), pred_w) + pred_b[...]          # [TMp, g*(R4+NC)] f32
                                                                # layout: reg(all groups) | cls(all groups)

    # --- DFL decode (fused epilogue) ---
    if reg_max > 1:
        reg = preds[:, :gR4]
        # single row-max; the shift cancels per side in the ratio below
        rmax = jnp.max(reg, axis=-1, keepdims=True)
        e = jnp.exp(reg - rmax)                                  # f32 (decode fidelity)
        # block-diagonal group matrix -> per-group, per-side [sums | weighted sums]
        sp = jnp.dot(e, dfl_w[...], preferred_element_type=jnp.float32)   # [TMp, 2*g4]
        dist = sp[:, g4:] * pl.reciprocal(sp[:, :g4])            # exact reciprocal, tiny
    else:
        dist = preds[:, :g4]

    # --- anchors from the global row index (no HBM anchor stream) ---
    col = jax.lax.broadcasted_iota(jnp.int32, (TMp, g4), 1)
    rr = jax.lax.broadcasted_iota(jnp.int32, (TMp, g4), 0)
    grp = jnp.right_shift(col, 2)                                # col // 4 (group in super-row)
    k = jnp.bitwise_and(col, 3)                                  # col % 4  (box side)
    ridx = pl.program_id(0) * (TMp * g) + rr * g + grp           # global flattened row, int32
    rf = ridx.astype(jnp.float32)
    # +0.5-shifted f32 floor divide: exact for B*M < ~4e6 rows (no boundary hazard)
    q = jnp.floor((rf + 0.5) * (1.0 / M))
    mloc = rf - q * M                                            # row index within the level
    gy = jnp.floor((mloc + 0.5) * (1.0 / fmp_w))
    gx = mloc - gy * fmp_w
    ax = (gx + 0.5) * stride
    ay = (gy + 0.5) * stride
    anc = jnp.where(jnp.bitwise_and(k, 1) == 0, ax, ay)          # x for sides 0,2; y for 1,3
    sgn = jnp.where(k < 2, -1.0, 1.0) * stride                   # x1y1 = a - d*s ; x2y2 = a + d*s
    box = anc + dist * sgn                                       # [TMp, g4]

    pad_w = C_pack - (gR4 + g * NC + g4)
    parts = [preds, box]
    if pad_w:
        parts.append(jnp.zeros((TMp, pad_w), jnp.float32))
    o_ref[...] = jnp.concatenate(parts, axis=-1).astype(o_ref.dtype)


def _run_level(x2d, fused, *, use_neck, stride, M, fmp_w, NC, reg_max, g, tm_target):
    """Run the fused per-level kernel on a [B*M, Cin] bf16 slab. Returns reg/cls/box 2D."""
    N, Cin = x2d.shape
    R4 = 4 * reg_max
    Cg = R4 + NC
    C_pack = _round_up(g * (Cg + 4), 128)

    Nsup = pl.cdiv(N, g)                         # super-rows (g pixels each)
    TMp_target = max(8, tm_target // g)
    # cap tile so grid_n >= 2 whenever the level allows it (v7x: both TCs get work)
    TMp = min(TMp_target, _round_up(pl.cdiv(Nsup, 2), 8))
    Nsup_pad = _round_up(Nsup, TMp)
    grid_n = Nsup_pad // TMp

    pad_rows = Nsup_pad * g - N
    if pad_rows:
        x2d = jnp.pad(x2d, ((0, pad_rows), (0, 0)))
    xp = x2d.reshape(Nsup_pad, g * Cin)

    const = lambda i: (0, 0)
    row = lambda i: (i, 0)

    inputs = [xp, fused["bb_w"], fused["bb_b"]]
    if use_neck:
        inputs += [fused["neck_w"], fused["neck_b"]]
    inputs += [fused["fpn_w"], fused["fpn_b"], fused["head_w"], fused["head_b"],
               fused["pred_w"], fused["pred_b"], fused["dfl_w"]]

    in_specs = [pl.BlockSpec((TMp, g * Cin), row)] + [
        pl.BlockSpec(a.shape, const) for a in inputs[1:]]        # weights VMEM-resident

    out = pl.pallas_call(
        functools.partial(_level_kernel, use_neck=use_neck, TMp=TMp, g=g, M=M,
                          fmp_w=fmp_w, NC=NC, reg_max=reg_max, stride=stride,
                          C_pack=C_pack),
        out_shape=jax.ShapeDtypeStruct((Nsup_pad, C_pack), jnp.float32),
        grid=(grid_n,),
        in_specs=in_specs,
        out_specs=pl.BlockSpec((TMp, C_pack), row),
        compiler_params=pltpu.CompilerParams(
            dimension_semantics=("parallel",),      # shard row tiles across v7x's 2 TCs
            vmem_limit_bytes=32 * 1024 * 1024,      # safe on v7x's 64 MiB physical VMEM
        ),
    )(*inputs)

    # un-pack the lane groups in the wrapper (cheap, group-major layout -> plain reshape)
    reg = out[:, :g * R4].reshape(Nsup_pad * g, R4)[:N]
    cls = out[:, g * R4:g * Cg].reshape(Nsup_pad * g, NC)[:N]
    box = out[:, g * Cg:g * (Cg + 4)].reshape(Nsup_pad * g, 4)[:N]
    return reg, cls, box


# --------------------------- model glue (plain JAX) -------------------------

def generate_anchors(level, fmp_size, strides):
    fmp_h, fmp_w = fmp_size
    ay, ax = jnp.meshgrid(jnp.arange(fmp_h), jnp.arange(fmp_w), indexing="ij")
    anchor_xy = jnp.stack([ax, ay], axis=-1).astype(jnp.float32).reshape(-1, 2) + 0.5
    return anchor_xy * float(strides[level])


def init_params(key, cfg, in_ch, num_classes, feat_dims):
    reg_max = cfg["reg_max"]
    init_prob = 0.01
    cls_bias_value = -jnp.log(jnp.asarray((1.0 - init_prob) / init_prob, jnp.float32))

    def w_init(k, cin, cout, scale=0.05):
        return scale * jax.random.normal(k, (cin, cout), jnp.float32)

    keys = jax.random.split(key, 6 * len(feat_dims) + 1)
    ki = iter(range(len(keys)))
    # proj matches the reference: torch.linspace(0, reg_max, reg_max)
    params = {"levels": [], "proj": jnp.linspace(0.0, reg_max, reg_max).astype(jnp.float32)}
    last_dim = feat_dims[-1]
    params["neck_w"] = w_init(keys[next(ki)], last_dim, last_dim)
    params["neck_b"] = jnp.zeros((last_dim,), jnp.float32)
    for d in feat_dims:
        p = {
            "bb_w": w_init(keys[next(ki)], in_ch, d),
            "bb_b": jnp.zeros((d,), jnp.float32),
            "fpn_w": w_init(keys[next(ki)], d, d),
            "fpn_b": jnp.zeros((d,), jnp.float32),
            "head_cls_w": w_init(keys[next(ki)], d, d),
            "head_cls_b": jnp.zeros((d,), jnp.float32),
            "head_reg_w": w_init(keys[next(ki)], d, d),
            "head_reg_b": jnp.zeros((d,), jnp.float32),
            # cls_pred: bias filled with -log((1-p)/p)   (init_yolo)
            "cls_pred_w": w_init(keys[next(ki)], d, num_classes, scale=0.01),
            "cls_pred_b": jnp.full((num_classes,), cls_bias_value, jnp.float32),
            # reg_pred: weight=0, bias=1                 (init_yolo)
            "reg_pred_w": jnp.zeros((d, 4 * reg_max), jnp.float32),
            "reg_pred_b": jnp.ones((4 * reg_max,), jnp.float32),
        }
        params["levels"].append(p)
    return params


def _fuse_level_params(p, params, num_classes, reg_max, g, use_neck,
                       compute_dtype=jnp.bfloat16):
    """Assemble block-diagonal (lane-packed) fused weights (trace-time, tiny arrays)."""
    d = p["fpn_w"].shape[0]
    R4 = 4 * reg_max
    eye = jnp.eye(g, dtype=jnp.float32)

    def blk(w):                       # block-diagonal replication over the g lane-groups
        return jnp.kron(eye, w)

    def tile_b(b):
        return jnp.tile(b, (g,)).reshape(1, -1)

    # decoupled head: one [d, 2d] matmul  (cols 0:d = cls_feat, d:2d = reg_feat)
    head_w = jnp.concatenate([p["head_cls_w"], p["head_reg_w"]], axis=1)
    head_b = jnp.concatenate([p["head_cls_b"], p["head_reg_b"]])
    # cls/reg prediction, reg columns packed group-major first, then cls columns
    reg_part = jnp.concatenate(
        [jnp.zeros((d, R4), jnp.float32), p["reg_pred_w"]], axis=0)          # [2d, R4]
    cls_part = jnp.concatenate(
        [p["cls_pred_w"], jnp.zeros((d, num_classes), jnp.float32)], axis=0)  # [2d, NC]
    pred_w = jnp.concatenate([blk(reg_part), blk(cls_part)], axis=1)          # [g*2d, g*(R4+NC)]
    pred_b = jnp.concatenate([jnp.tile(p["reg_pred_b"], (g,)),
                              jnp.tile(p["cls_pred_b"], (g,))]).reshape(1, -1)
    # DFL group/projection matrix per group: [R4, 8] = [per-side sums | per-side proj sums]
    idx = jnp.arange(R4)
    onehot = (idx[:, None] // reg_max == jnp.arange(4)[None, :]).astype(jnp.float32)
    wsum = onehot * params["proj"][idx % reg_max][:, None]
    dfl_w = jnp.concatenate([blk(onehot), blk(wsum)], axis=1)                 # [g*R4, g*8]

    c = compute_dtype
    fused = {
        "bb_w": blk(p["bb_w"]).astype(c), "bb_b": tile_b(p["bb_b"]),
        "fpn_w": blk(p["fpn_w"]).astype(c), "fpn_b": tile_b(p["fpn_b"]),
        "head_w": blk(head_w).astype(c), "head_b": tile_b(head_b),
        "pred_w": pred_w.astype(c), "pred_b": pred_b,
        "dfl_w": dfl_w,  # stays f32 (exact DFL expectation)
    }
    if use_neck:
        fused["neck_w"] = blk(params["neck_w"]).astype(c)
        fused["neck_b"] = tile_b(params["neck_b"])
    return fused


def yolov8_forward(params, x_nchw, cfg, num_classes, tm_target=2048):
    strides = cfg["stride"]
    reg_max = cfg["reg_max"]
    x = jnp.transpose(x_nchw, (0, 2, 3, 1)).astype(jnp.float32)  # NCHW -> NHWC
    B, H, W, Cin = x.shape

    # TODO(synk): stand-in backbone — chained strided mean-pool pyramid so the
    # full-resolution input is read from HBM only once (level k pooled from k-1).
    pools = []
    prev, prev_s = x, 1
    for s in strides:
        r = s // prev_s
        ph, pw = prev.shape[1], prev.shape[2]
        prev = prev.reshape(B, ph // r, r, pw // r, r, Cin).mean(axis=(2, 4))
        prev_s = s
        pools.append(prev)

    all_anchors, all_cls, all_reg, all_box, all_stride_t = [], [], [], [], []
    for level, s in enumerate(strides):
        p = params["levels"][level]
        fl = pools[level]
        h, w = fl.shape[1], fl.shape[2]
        M = h * w
        x2d = fl.reshape(B * M, Cin).astype(jnp.bfloat16)

        d = p["fpn_w"].shape[0]
        g = max(1, 128 // d)                       # lane-pack factor (d=32 -> 4, 48/64 -> 2)
        use_neck = (level == len(strides) - 1)     # neck applied to last pyramid level
        fused = _fuse_level_params(p, params, num_classes, reg_max, g, use_neck)
        reg2d, cls2d, box2d = _run_level(
            x2d, fused, use_neck=use_neck,
            stride=float(s), M=M, fmp_w=w, NC=num_classes, reg_max=reg_max,
            g=g, tm_target=tm_target)

        all_reg.append(reg2d.reshape(B, M, 4 * reg_max))
        all_cls.append(cls2d.reshape(B, M, num_classes))
        all_box.append(box2d.reshape(B, M, 4))
        all_anchors.append(generate_anchors(level, (h, w), strides))
        all_stride_t.append(jnp.full((M, 1), float(s), jnp.float32))

    return {
        "pred_cls": all_cls,
        "pred_reg": all_reg,
        "pred_box": all_box,
        "anchors": all_anchors,
        "strides": strides,
        "stride_tensor": all_stride_t,
    }


if __name__ == "__main__":
    cfg = {"stride": [8, 16, 32], "reg_max": 16, "pretrained": False}
    num_classes = 20
    feat_dims = [32, 48, 64]

    key = jax.random.PRNGKey(0)
    kx, kp = jax.random.split(key)
    # 64x64 keeps the script small while exercising the multi-step (grid>1) path
    # on levels 0/1 and the lane-packed (g=4 / g=2) layouts.
    x = jax.random.normal(kx, (2, 4, 64, 64), jnp.float32)  # NCHW like PyTorch
    params = init_params(kp, cfg, in_ch=4, num_classes=num_classes, feat_dims=feat_dims)

    out = yolov8_forward(params, x, cfg, num_classes, tm_target=2048)

    for leaf in jax.tree_util.tree_leaves(out):
        if isinstance(leaf, jax.Array):
            leaf.block_until_ready()

    # sanity: shapes + box decode self-check (reg_pred weight=0, bias=1 -> uniform
    # DFL softmax -> expected distance = mean(proj) = reg_max/2 on every side).
    exp_dist = float(jnp.mean(params["proj"]))
    for lvl, s in enumerate(cfg["stride"]):
        m = (64 // s) * (64 // s)
        assert out["pred_cls"][lvl].shape == (2, m, num_classes)
        assert out["pred_reg"][lvl].shape == (2, m, 4 * cfg["reg_max"])
        assert out["pred_box"][lvl].shape == (2, m, 4)
        assert out["anchors"][lvl].shape == (m, 2)
        reg_err = float(jnp.max(jnp.abs(out["pred_reg"][lvl] - 1.0)))
        assert reg_err < 1e-2, f"reg logits mismatch at level {lvl}: {reg_err}"
        anc = out["anchors"][lvl]
        expected = jnp.concatenate([anc - exp_dist * s, anc + exp_dist * s], axis=-1)
        err = float(jnp.max(jnp.abs(out["pred_box"][lvl] - expected[None])))
        assert err < 1e-2, f"box decode mismatch at level {lvl}: {err}"
        assert bool(jnp.all(jnp.isfinite(out["pred_cls"][lvl])))

    print("KERNEL_OK")
</pallas_src>

<mosaic_0001>
module attributes {stable_mosaic.version = 11 : i64} {
  func.func @_level_kernel(%arg0: i32, %arg1: memref<16x16xbf16, #tpu.memory_space<vmem>>, %arg2: memref<16x128xbf16, #tpu.memory_space<vmem>>, %arg3: memref<1x128xf32, #tpu.memory_space<vmem>>, %arg4: memref<128x128xbf16, #tpu.memory_space<vmem>>, %arg5: memref<1x128xf32, #tpu.memory_space<vmem>>, %arg6: memref<128x256xbf16, #tpu.memory_space<vmem>>, %arg7: memref<1x256xf32, #tpu.memory_space<vmem>>, %arg8: memref<256x336xbf16, #tpu.memory_space<vmem>>, %arg9: memref<1x336xf32, #tpu.memory_space<vmem>>, %arg10: memref<256x32xf32, #tpu.memory_space<vmem>>, %arg11: memref<16x384xf32, #tpu.memory_space<vmem>>) attributes {dimension_semantics = [#tpu.dimension_semantics<parallel>], iteration_bounds = array<i64: 2>, scalar_prefetch = 0 : i64, scratch_operands = 0 : i64, tpu.core_type = #tpu.core_type<tc>, window_params = [{transform_indices = @transform_0, window_bounds = array<i64: 16, 16>}, {pipeline_mode = #tpu.pipeline_mode<synchronous>, transform_indices = @transform_1, window_bounds = array<i64: 16, 128>}, {pipeline_mode = #tpu.pipeline_mode<synchronous>, transform_indices = @transform_2, window_bounds = array<i64: 1, 128>}, {pipeline_mode = #tpu.pipeline_mode<synchronous>, transform_indices = @transform_3, window_bounds = array<i64: 128, 128>}, {pipeline_mode = #tpu.pipeline_mode<synchronous>, transform_indices = @transform_4, window_bounds = array<i64: 1, 128>}, {pipeline_mode = #tpu.pipeline_mode<synchronous>, transform_indices = @transform_5, window_bounds = array<i64: 128, 256>}, {pipeline_mode = #tpu.pipeline_mode<synchronous>, transform_indices = @transform_6, window_bounds = array<i64: 1, 256>}, {pipeline_mode = #tpu.pipeline_mode<synchronous>, transform_indices = @transform_7, window_bounds = array<i64: 256, 336>}, {pipeline_mode = #tpu.pipeline_mode<synchronous>, transform_indices = @transform_8, window_bounds = array<i64: 1, 336>}, {pipeline_mode = #tpu.pipeline_mode<synchronous>, transform_indices = @transform_9, window_bounds = array<i64: 256, 32>}, {transform_indices = @transform_10, window_bounds = array<i64: 16, 384>}]} {
    %c0 = arith.constant 0 : index
    %c0_0 = arith.constant 0 : index
    %0 = vector.load %arg1[%c0, %c0_0] : memref<16x16xbf16, #tpu.memory_space<vmem>>, vector<16x16xbf16>
    %c0_1 = arith.constant 0 : index
    %c0_2 = arith.constant 0 : index
    %1 = vector.load %arg2[%c0_1, %c0_2] : memref<16x128xbf16, #tpu.memory_space<vmem>>, vector<16x128xbf16>
    %cst = arith.constant dense<0.000000e+00> : vector<16x128xf32>
    %2 = tpu.matmul %0, %1, %cst {dimension_numbers = #tpu.dot_dimension_numbers<[1], [0], [0], [1], [0, 0, 1, 1], [], []>} : vector<16x16xbf16>, vector<16x128xbf16>, vector<16x128xf32> -> vector<16x128xf32>
    %c0_3 = arith.constant 0 : index
    %c0_4 = arith.constant 0 : index
    %3 = vector.load %arg3[%c0_3, %c0_4] : memref<1x128xf32, #tpu.memory_space<vmem>>, vector<1x128xf32>
    %4 = vector.broadcast %3 : vector<1x128xf32> to vector<16x128xf32>
    %5 = arith.addf %2, %4 : vector<16x128xf32>
    %cst_5 = arith.constant 5.000000e-01 : f32
    %6 = vector.broadcast %cst_5 : f32 to vector<16x128xf32>
    %7 = arith.mulf %6, %5 : vector<16x128xf32>
    %8 = arith.truncf %7 : vector<16x128xf32> to vector<16x128xbf16>
    %9 = math.tanh %8 : vector<16x128xbf16>
    %10 = arith.extf %9 : vector<16x128xbf16> to vector<16x128xf32>
    %cst_6 = arith.constant 1.000000e+00 : f32
    %11 = vector.broadcast %cst_6 : f32 to vector<16x128xf32>
    %12 = arith.addf %11, %10 : vector<16x128xf32>
    %13 = arith.mulf %7, %12 : vector<16x128xf32>
    %14 = arith.truncf %13 : vector<16x128xf32> to vector<16x128xbf16>
    %c0_7 = arith.constant 0 : index
    %c0_8 = arith.constant 0 : index
    %15 = vector.load %arg4[%c0_7, %c0_8] : memref<128x128xbf16, #tpu.memory_space<vmem>>, vector<128x128xbf16>
    %cst_9 = arith.constant dense<0.000000e+00> : vector<16x128xf32>
    %16 = tpu.matmul %14, %15, %cst_9 {dimension_numbers = #tpu.dot_dimension_numbers<[1], [0], [0], [1], [0, 0, 1, 1], [], []>} : vector<16x128xbf16>, vector<128x128xbf16>, vector<16x128xf32> -> vector<16x128xf32>
    %c0_10 = arith.constant 0 : index
    %c0_11 = arith.constant 0 : index
    %17 = vector.load %arg5[%c0_10, %c0_11] : memref<1x128xf32, #tpu.memory_space<vmem>>, vector<1x128xf32>
    %18 = vector.broadcast %17 : vector<1x128xf32> to vector<16x128xf32>
    %19 = arith.addf %16, %18 : vector<16x128xf32>
    %cst_12 = arith.constant 5.000000e-01 : f32
    %20 = vector.broadcast %cst_12 : f32 to vector<16x128xf32>
    %21 = arith.mulf %20, %19 : vector<16x128xf32>
    %22 = arith.truncf %21 : vector<16x128xf32> to vector<16x128xbf16>
    %23 = math.tanh %22 : vector<16x128xbf16>
    %24 = arith.extf %23 : vector<16x128xbf16> to vector<16x128xf32>
    %cst_13 = arith.constant 1.000000e+00 : f32
    %25 = vector.broadcast %cst_13 : f32 to vector<16x128xf32>
    %26 = arith.addf %25, %24 : vector<16x128xf32>
    %27 = arith.mulf %21, %26 : vector<16x128xf32>
    %28 = arith.truncf %27 : vector<16x128xf32> to vector<16x128xbf16>
    %c0_14 = arith.constant 0 : index
    %c0_15 = arith.constant 0 : index
    %29 = vector.load %arg6[%c0_14, %c0_15] : memref<128x256xbf16, #tpu.memory_space<vmem>>, vector<128x256xbf16>
    %cst_16 = arith.constant dense<0.000000e+00> : vector<16x256xf32>
    %30 = tpu.matmul %28, %29, %cst_16 {dimension_numbers = #tpu.dot_dimension_numbers<[1], [0], [0], [1], [0, 0, 1, 1], [], []>} : vector<16x128xbf16>, vector<128x256xbf16>, vector<16x256xf32> -> vector<16x256xf32>
    %c0_17 = arith.constant 0 : index
    %c0_18 = arith.constant 0 : index
    %31 = vector.load %arg7[%c0_17, %c0_18] : memref<1x256xf32, #tpu.memory_space<vmem>>, vector<1x256xf32>
    %32 = vector.broadcast %31 : vector<1x256xf32> to vector<16x256xf32>
    %33 = arith.addf %30, %32 : vector<16x256xf32>
    %cst_19 = arith.constant 5.000000e-01 : f32
    %34 = vector.broadcast %cst_19 : f32 to vector<16x256xf32>
    %35 = arith.mulf %34, %33 : vector<16x256xf32>
    %36 = arith.truncf %35 : vector<16x256xf32> to vector<16x256xbf16>
    %37 = math.tanh %36 : vector<16x256xbf16>
    %38 = arith.extf %37 : vector<16x256xbf16> to vector<16x256xf32>
    %cst_20 = arith.constant 1.000000e+00 : f32
    %39 = vector.broadcast %cst_20 : f32 to vector<16x256xf32>
    %40 = arith.addf %39, %38 : vector<16x256xf32>
    %41 = arith.mulf %35, %40 : vector<16x256xf32>
    %42 = arith.truncf %41 : vector<16x256xf32> to vector<16x256xbf16>
    %c0_21 = arith.constant 0 : index
    %c0_22 = arith.constant 0 : index
    %43 = vector.load %arg8[%c0_21, %c0_22] : memref<256x336xbf16, #tpu.memory_space<vmem>>, vector<256x336xbf16>
    %cst_23 = arith.constant dense<0.000000e+00> : vector<16x336xf32>
    %44 = tpu.matmul %42, %43, %cst_23 {dimension_numbers = #tpu.dot_dimension_numbers<[1], [0], [0], [1], [0, 0, 1, 1], [], []>} : vector<16x256xbf16>, vector<256x336xbf16>, vector<16x336xf32> -> vector<16x336xf32>
    %c0_24 = arith.constant 0 : index
    %c0_25 = arith.constant 0 : index
    %45 = vector.load %arg9[%c0_24, %c0_25] : memref<1x336xf32, #tpu.memory_space<vmem>>, vector<1x336xf32>
    %46 = vector.broadcast %45 : vector<1x336xf32> to vector<16x336xf32>
    %47 = arith.addf %44, %46 : vector<16x336xf32>
    %48 = vector.extract_strided_slice %47 {offsets = [0, 0], sizes = [16, 256], strides = [1, 1]} : vector<16x336xf32> to vector<16x256xf32>
    %cst_26 = arith.constant dense<0xFF800000> : vector<16xf32>
    %49 = vector.multi_reduction <maximumf>, %48, %cst_26 [1] : vector<16x256xf32> to vector<16xf32>
    %50 = vector.shape_cast %49 : vector<16xf32> to vector<16x1xf32>
    %51 = vector.broadcast %50 : vector<16x1xf32> to vector<16x256xf32>
    %52 = arith.subf %48, %51 : vector<16x256xf32>
    %53 = math.exp %52 : vector<16x256xf32>
    %c0_27 = arith.constant 0 : index
    %c0_28 = arith.constant 0 : index
    %54 = vector.load %arg10[%c0_27, %c0_28] : memref<256x32xf32, #tpu.memory_space<vmem>>, vector<256x32xf32>
    %cst_29 = arith.constant dense<0.000000e+00> : vector<16x32xf32>
    %55 = tpu.matmul %53, %54, %cst_29 {dimension_numbers = #tpu.dot_dimension_numbers<[1], [0], [0], [1], [0, 0, 1, 1], [], []>} : vector<16x256xf32>, vector<256x32xf32>, vector<16x32xf32> -> vector<16x32xf32>
    %56 = vector.extract_strided_slice %55 {offsets = [0, 16], sizes = [16, 16], strides = [1, 1]} : vector<16x32xf32> to vector<16x16xf32>
    %57 = vector.extract_strided_slice %55 {offsets = [0, 0], sizes = [16, 16], strides = [1, 1]} : vector<16x32xf32> to vector<16x16xf32>
    %58 = tpu.reciprocal %57 : vector<16x16xf32> -> vector<16x16xf32>
    %59 = arith.mulf %56, %58 : vector<16x16xf32>
    %60 = tpu.iota {dimensions = array<i32: 1>} : vector<16x16xi32>
    %61 = tpu.iota {dimensions = array<i32: 0>} : vector<16x16xi32>
    %c2_i32 = arith.constant 2 : i32
    %62 = vector.broadcast %c2_i32 : i32 to vector<16x16xi32>
    %63 = arith.shrsi %60, %62 : vector<16x16xi32>
    %c3_i32 = arith.constant 3 : i32
    %64 = vector.broadcast %c3_i32 : i32 to vector<16x16xi32>
    %65 = arith.andi %60, %64 : vector<16x16xi32>
    %c64_i32 = arith.constant 64 : i32
    %66 = arith.muli %arg0, %c64_i32 : i32
    %c4_i32 = arith.constant 4 : i32
    %67 = vector.broadcast %c4_i32 : i32 to vector<16x16xi32>
    %68 = arith.muli %61, %67 : vector<16x16xi32>
    %69 = vector.broadcast %66 : i32 to vector<16x16xi32>
    %70 = arith.addi %69, %68 : vector<16x16xi32>
    %71 = arith.addi %70, %63 : vector<16x16xi32>
    %72 = arith.sitofp %71 : vector<16x16xi32> to vector<16x16xf32>
    %cst_30 = arith.constant 5.000000e-01 : f32
    %73 = vector.broadcast %cst_30 : f32 to vector<16x16xf32>
    %74 = arith.addf %72, %73 : vector<16x16xf32>
    %cst_31 = arith.constant 1.562500e-02 : f32
    %75 = vector.broadcast %cst_31 : f32 to vector<16x16xf32>
    %76 = arith.mulf %74, %75 : vector<16x16xf32>
    %77 = math.floor %76 : vector<16x16xf32>
    %cst_32 = arith.constant 6.400000e+01 : f32
    %78 = vector.broadcast %cst_32 : f32 to vector<16x16xf32>
    %79 = arith.mulf %77, %78 : vector<16x16xf32>
    %80 = arith.subf %72, %79 : vector<16x16xf32>
    %cst_33 = arith.constant 5.000000e-01 : f32
    %81 = vector.broadcast %cst_33 : f32 to vector<16x16xf32>
    %82 = arith.addf %80, %81 : vector<16x16xf32>
    %cst_34 = arith.constant 1.250000e-01 : f32
    %83 = vector.broadcast %cst_34 : f32 to vector<16x16xf32>
    %84 = arith.mulf %82, %83 : vector<16x16xf32>
    %85 = math.floor %84 : vector<16x16xf32>
    %cst_35 = arith.constant 8.000000e+00 : f32
    %86 = vector.broadcast %cst_35 : f32 to vector<16x16xf32>
    %87 = arith.mulf %85, %86 : vector<16x16xf32>
    %88 = arith.subf %80, %87 : vector<16x16xf32>
    %cst_36 = arith.constant 5.000000e-01 : f32
    %89 = vector.broadcast %cst_36 : f32 to vector<16x16xf32>
    %90 = arith.addf %88, %89 : vector<16x16xf32>
    %cst_37 = arith.constant 8.000000e+00 : f32
    %91 = vector.broadcast %cst_37 : f32 to vector<16x16xf32>
    %92 = arith.mulf %90, %91 : vector<16x16xf32>
    %cst_38 = arith.constant 5.000000e-01 : f32
    %93 = vector.broadcast %cst_38 : f32 to vector<16x16xf32>
    %94 = arith.addf %85, %93 : vector<16x16xf32>
    %cst_39 = arith.constant 8.000000e+00 : f32
    %95 = vector.broadcast %cst_39 : f32 to vector<16x16xf32>
    %96 = arith.mulf %94, %95 : vector<16x16xf32>
    %c1_i32 = arith.constant 1 : i32
    %97 = vector.broadcast %c1_i32 : i32 to vector<16x16xi32>
    %98 = arith.andi %65, %97 : vector<16x16xi32>
    %c0_i32 = arith.constant 0 : i32
    %99 = vector.broadcast %c0_i32 : i32 to vector<16x16xi32>
    %100 = arith.cmpi eq, %98, %99 : vector<16x16xi32>
    %101 = arith.select %100, %92, %96 : vector<16x16xi1>, vector<16x16xf32>
    %c2_i32_40 = arith.constant 2 : i32
    %102 = vector.broadcast %c2_i32_40 : i32 to vector<16x16xi32>
    %103 = arith.cmpi slt, %65, %102 : vector<16x16xi32>
    %cst_41 = arith.constant -1.000000e+00 : f32
    %cst_42 = arith.constant 1.000000e+00 : f32
    %104 = vector.broadcast %cst_41 : f32 to vector<16x16xf32>
    %105 = vector.broadcast %cst_42 : f32 to vector<16x16xf32>
    %106 = arith.select %103, %104, %105 : vector<16x16xi1>, vector<16x16xf32>
    %cst_43 = arith.constant 8.000000e+00 : f32
    %107 = vector.broadcast %cst_43 : f32 to vector<16x16xf32>
    %108 = arith.mulf %106, %107 : vector<16x16xf32>
    %109 = arith.mulf %59, %108 : vector<16x16xf32>
    %110 = arith.addf %101, %109 : vector<16x16xf32>
    %cst_44 = arith.constant 0.000000e+00 : f32
    %111 = vector.broadcast %cst_44 : f32 to vector<16x32xf32>
    %112 = tpu.concatenate %47, %110, %111 in 1 : vector<16x336xf32>, vector<16x16xf32>, vector<16x32xf32> -> vector<16x384xf32>
    %c0_45 = arith.constant 0 : index
    %c0_46 = arith.constant 0 : index
    %113 = vector.load %arg11[%c0_45, %c0_46] : memref<16x384xf32, #tpu.memory_space<vmem>>, vector<16x384xf32>
    tpu.vector_store %arg11[%c0_45, %c0_46], %112 {strides = array<i32>} : memref<16x384xf32, #tpu.memory_space<vmem>>, vector<16x384xf32>,
    return
  }
  func.func @transform_0(%arg0: i32) -> (i32, i32) {
    %c0_i32 = arith.constant 0 : i32
    %c0_i32_0 = arith.constant 0 : i32
    return %arg0, %c0_i32 : i32, i32
  }
  func.func @transform_1(%arg0: i32) -> (i32, i32) {
    %c0_i32 = arith.constant 0 : i32
    %c0_i32_0 = arith.constant 0 : i32
    %c0_i32_1 = arith.constant 0 : i32
    return %c0_i32, %c0_i32_0 : i32, i32
  }
  func.func @transform_2(%arg0: i32) -> (i32, i32) {
    %c0_i32 = arith.constant 0 : i32
    %c0_i32_0 = arith.constant 0 : i32
    %c0_i32_1 = arith.constant 0 : i32
    return %c0_i32, %c0_i32_0 : i32, i32
  }
  func.func @transform_3(%arg0: i32) -> (i32, i32) {
    %c0_i32 = arith.constant 0 : i32
    %c0_i32_0 = arith.constant 0 : i32
    %c0_i32_1 = arith.constant 0 : i32
    return %c0_i32, %c0_i32_0 : i32, i32
  }
  func.func @transform_4(%arg0: i32) -> (i32, i32) {
    %c0_i32 = arith.constant 0 : i32
    %c0_i32_0 = arith.constant 0 : i32
    %c0_i32_1 = arith.constant 0 : i32
    return %c0_i32, %c0_i32_0 : i32, i32
  }
  func.func @transform_5(%arg0: i32) -> (i32, i32) {
    %c0_i32 = arith.constant 0 : i32
    %c0_i32_0 = arith.constant 0 : i32
    %c0_i32_1 = arith.constant 0 : i32
    return %c0_i32, %c0_i32_0 : i32, i32
  }
  func.func @transform_6(%arg0: i32) -> (i32, i32) {
    %c0_i32 = arith.constant 0 : i32
    %c0_i32_0 = arith.constant 0 : i32
    %c0_i32_1 = arith.constant 0 : i32
    return %c0_i32, %c0_i32_0 : i32, i32
  }
  func.func @transform_7(%arg0: i32) -> (i32, i32) {
    %c0_i32 = arith.constant 0 : i32
    %c0_i32_0 = arith.constant 0 : i32
    %c0_i32_1 = arith.constant 0 : i32
    return %c0_i32, %c0_i32_0 : i32, i32
  }
  func.func @transform_8(%arg0: i32) -> (i32, i32) {
    %c0_i32 = arith.constant 0 : i32
    %c0_i32_0 = arith.constant 0 : i32
    %c0_i32_1 = arith.constant 0 : i32
    return %c0_i32, %c0_i32_0 : i32, i32
  }
  func.func @transform_9(%arg0: i32) -> (i32, i32) {
    %c0_i32 = arith.constant 0 : i32
    %c0_i32_0 = arith.constant 0 : i32
    %c0_i32_1 = arith.constant 0 : i32
    return %c0_i32, %c0_i32_0 : i32, i32
  }
  func.func @transform_10(%arg0: i32) -> (i32, i32) {
    %c0_i32 = arith.constant 0 : i32
    %c0_i32_0 = arith.constant 0 : i32
    return %arg0, %c0_i32 : i32, i32
  }
}

</mosaic_0001>

<bundles_post_ra>
// kernel: tpu_custom_call.1
= control target key start
LH: loop header
LB: loop body
LE: loop exit
PB: predicated region body
PF: predicated region fallthrough
CT: control target
= control target key end

     0   :  { %15 = vsyncpa [#allocation3], 0  ;;  %s2453_s0 = inlined_call_operand.vmem [shape: bf16[32,16], index: 0, kind: input, shape index: {}]   ;;  %s2454_s1 = inlined_call_operand.vmem [shape: bf16[16,128], index: 1, kind: input, shape index: {}]   ;;  %s2455_s2 = inlined_call_operand.vmem [shape: f32[1,128], index: 2, kind: input, shape index: {}]   ;;  %s2456_s3 = inlined_call_operand.vmem [shape: bf16[128,128], index: 3, kind: input, shape index: {}]   ;;  %s2457_s4 = inlined_call_operand.vmem [shape: f32[1,128], index: 4, kind: input, shape index: {}]   ;;  %s2458_s5 = inlined_call_operand.vmem [shape: bf16[128,256], index: 5, kind: input, shape index: {}]   ;;  %s2459_s6 = inlined_call_operand.vmem [shape: f32[1,256], index: 6, kind: input, shape index: {}]   ;;  %s2460_s7 = inlined_call_operand.vmem [shape: bf16[256,336], index: 7, kind: input, shape index: {}]   ;;  %s2461_s8 = inlined_call_operand.vmem [shape: f32[1,336], index: 8, kind: input, shape index: {}]   ;;  %s2462_s9 = inlined_call_operand.vmem [shape: f32[256,32], index: 9, kind: input, shape index: {}]   ;;  %s2463_s10 = inlined_call_operand.hbm [shape: f32[32,384], index: 10, kind: output, shape index: {}]  }
   0x1   :  { %17 = vsyncpa [#allocation3 + $0x1], 0  ;;  %s1974_s13 = smov 0   ;;  %s1976_s14 = smov 0  }
   0x2   :  { %s1978_s15 = smov 0   ;;  %s1980_s16 = smov 0  }
   0x3 LB: > { %s1995_s17 = sadd.s32 4294967295, %s1907_s16   ;;  %s1459_s18 = sadd.s32 4294967294, %s1907_s16   ;;  %s1907_s16 = sphi %s1980_s16, %s2471_s16   ;;  %s1903_s15 = sphi %s1978_s15, %s2470_s15   ;;  %s1899_s14 = sphi %s1976_s14, %s2469_s14   ;;  %s1895_s13 = sphi %s1974_s13, %s2468_s13  }
   0x4   : > { %s1999_s19 = sadd.s32 1, %s1907_s16   ;;  %s245_s20 = sadd.s32 1, %s1903_s15 }
   0x5   : > { %s242_s21 = ssub.s32 %s1907_s16, %s1999_s19  ;;  %p255_p0 = scmp.ne.s32.totalorder %s1903_s15, %s1899_s14 }
   0x6   : > { %p243_p1 = scmp.eq.s32.totalorder %s242_s21, 0  ;;  %p256_p2 = scmp.eq.s32.totalorder %s1995_s17, 1 }
   0x7   : > { %p261_p3 = scmp.ne.s32.totalorder %s1899_s14, %s1895_s13  ;;  %p262_p4 = scmp.eq.s32.totalorder %s1459_s18, 1 }
   0x8   : > { %s2010_s22 = scalar_select %p243_p1, %s1903_s15, %s245_s20  }
   0x9   : > { %p2012_p5 = por %p256_p2, %p255_p0  ;;  %p2016_p6 = por %p262_p4, %p261_p3 }
   0xa   : > { %p1462_p7 = scmp.ge.s32.totalorder %s1907_s16, 1  ;;  %p316_p8 = scmp.lt.s32.totalorder %s1907_s16, 3 }
   0xc   : > { %p317_p9 = pnand %p1462_p7, %p316_p8 }
   0xd   : > { %v1727_v0 = vld [vmem:[%s2454_s1] sm:$0xff] (!%p317_p9)   ;;  %v1909_v1 = vmov (!%p317_p9), 0.0   ;;  %s1463_s27 = sshll.u32 (!%p317_p9), %s1995_s17, 1  ;;  %vm1910_vm0 = vmmov (!%p317_p9), 0   ;;  %vm384_vm1 = vcmask (!%p317_p9), 130048   ;;  %v1730_v4 = vld [vmem:[%s2456_s3 + $0x8] sm:$0xff] (!%p317_p9)  }
   0xe   : > { %320 = sbr.rel (%p317_p9) target bundleno = 1721 (0x6b9), region = 60  ;;  %1619 = vmatprep.subr.bf16.mxu0 (!%p317_p9), %v1909_v1  ;;  %1625 = vmatprep.subr.bf16.mxu1 (!%p317_p9), %v1909_v1  ;;  %v1729_v2 = vld [vmem:[%s2456_s3] sm:$0xff] (!%p317_p9)   ;;  %p355_p10 = scmp.lt.s32.totalorder (!%p317_p9), %s1463_s27, 3  ;;  %v1731_v5 = vld [vmem:[%s2456_s3 + $0x10] sm:$0xff] (!%p317_p9)   ;;  %v1732_v6 = vld [vmem:[%s2456_s3 + $0x18] sm:$0xff] (!%p317_p9)   ;;  %v1911_v45 = vmov (!%p317_p9), 0  }
   0xf   : > { %1620 = vmatpush3.bf16.msra.mxu0 (!%p317_p9), %v1727_v0  ;;  %1621 = vmatprep.mubr.msk.bf16.mxu0 (!%p317_p9), %vm1910_vm0, %v1909_v1  ;;  %v1733_v7 = vld [vmem:[%s2456_s3 + $0x20] sm:$0xff] (!%p317_p9)   ;;  %v1734_v8 = vld [vmem:[%s2456_s3 + $0x28] sm:$0xff] (!%p317_p9)   ;;  %v1735_v9 = vld [vmem:[%s2456_s3 + $0x30] sm:$0xff] (!%p317_p9)   ;;  %s2464_s28 = sand.u32 (!%p317_p9), 1, %s1899_s14   ;;  %s1913_s20 = smov (!%p317_p9), 16   ;;  %vm1370_vm4 = vcmask (!%p317_p9), 654336  }
  0x10   : > { %1626 = vmatpush3.bf16.msra.mxu1 (!%p317_p9), %v1729_v2  ;;  %1641 = vmatprep.mubr.msk.bf16.mxu1 (!%p317_p9), %vm1910_vm0, %v1909_v1  ;;  %v1736_v10 = vld [vmem:[%s2456_s3 + $0x38] sm:$0xff] (!%p317_p9)   ;;  %v1737_v11 = vld [vmem:[%s2458_s5] ss:$8 sps:$4 sm:$0xff] (!%p317_p9)   ;;  %v1739_v12 = vld [vmem:[%s2458_s5 + $0x4] ss:$8 sps:$4 sm:$0xff] (!%p317_p9)   ;;  %s1914_s21 = smov (!%p317_p9), 112  }
  0x11   : > { %1627 = vmatprep.subr.bf16.mxu1 (!%p317_p9), %v1909_v1  ;;  %671 = vmatprep.subr.bf16.mxu0 (!%p317_p9), %v1739_v12  ;;  %v1465_v13 = vld [vmem:[%s2455_s2] ss:$0 sm:$0xff] (!%p317_p9)  ;;  %v1742_v31 = vld [vmem:[%s2458_s5 + $0x14] ss:$8 sps:$4 sm:$0xff] (!%p317_p9)   ;;  %v1740_v32 = vld [vmem:[%s2458_s5 + $0x10] ss:$8 sps:$4 sm:$0xff] (!%p317_p9)  }
  0x12   : > { %v1745_v33 = vld [vmem:[%s2458_s5 + $0x24] ss:$8 sps:$4 sm:$0xff] (!%p317_p9)   ;;  %v1743_v34 = vld [vmem:[%s2458_s5 + $0x20] ss:$8 sps:$4 sm:$0xff] (!%p317_p9)   ;;  %v1748_v35 = vld [vmem:[%s2458_s5 + $0x34] ss:$8 sps:$4 sm:$0xff] (!%p317_p9)  }
  0x13   : > { %v1746_v36 = vld [vmem:[%s2458_s5 + $0x30] ss:$8 sps:$4 sm:$0xff] (!%p317_p9)   ;;  %v1751_v37 = vld [vmem:[%s2458_s5 + $0x44] ss:$8 sps:$4 sm:$0xff] (!%p317_p9)   ;;  %v1749_v38 = vld [vmem:[%s2458_s5 + $0x40] ss:$8 sps:$4 sm:$0xff] (!%p317_p9)  }
  0x14   : > { %1628 = vmatpush3.bf16.msra.mxu1 (!%p317_p9), %v1730_v4  ;;  %v1754_v39 = vld [vmem:[%s2458_s5 + $0x54] ss:$8 sps:$4 sm:$0xff] (!%p317_p9)   ;;  %v1752_v40 = vld [vmem:[%s2458_s5 + $0x50] ss:$8 sps:$4 sm:$0xff] (!%p317_p9)   ;;  %v1757_v41 = vld [vmem:[%s2458_s5 + $0x64] ss:$8 sps:$4 sm:$0xff] (!%p317_p9)  }
  0x15   : > { %s2473_s27 = smov (!%p355_p10, %s1463_s27), 3  ;;  %1629 = vmatprep.subr.bf16.mxu1 %v1909_v1  ;;  %v1755_v42 = vld [vmem:[%s2458_s5 + $0x60] ss:$8 sps:$4 sm:$0xff]   ;;  %v1760_v43 = vld [vmem:[%s2458_s5 + $0x74] ss:$8 sps:$4 sm:$0xff]   ;;  %s1542_s25 = sshll.u32 %s1995_s17, 6 }
  0x16   : > { %s1464_s30 = sshll.u32 %s2473_s27, 2  ;;  %v1758_v44 = vld [vmem:[%s2458_s5 + $0x70] ss:$8 sps:$4 sm:$0xff]   ;;  %v1761_v46 = vld [vmem:[%s2460_s7] ss:$12 sps:$4 sm:$0xff]   ;;  %s1915_s26 = smov 80  }
  0x17   : > { %s358_s18 = scalar_lea.vmem %s2453_s0, %s1464_s30  ;;  %v1763_v47 = vld [vmem:[%s2460_s7 + $0x4] ss:$12 sps:$4 sm:$0xff]   ;;  %v1766_v48 = vld [vmem:[%s2460_s7 + $0x1c] ss:$12 sps:$4 sm:$0xff]   ;;  %v1769_v50 = vld [vmem:[%s2460_s7 + $0x34] ss:$12 sps:$4 sm:$0xff]  }
  0x18   : > { %v1728_v3 = vld [vmem:[%s358_s18] sm:$0xff]   ;;  %1630 = vmatpush3.bf16.msra.mxu1 %v1731_v5  ;;  %v1788_v51 = vld [vmem:[%s2460_s7 + $0xc8] ss:$12 sps:$4 sm:$0xff]   ;;  %v1767_v52 = vld [vmem:[%s2460_s7 + $0x30] ss:$12 sps:$4 sm:$0xff]   ;;  %s1677_s30 = smul.u32 48, %s2464_s28 }
  0x19   : > { %1622 = vmatmul.mubr.msk.bf16.vlgmr.msra.gmra.mrb[0].mxu0 %vm384_vm1, %v1728_v3  ;;  %1631 = vmatprep.subr.bf16.mxu1 %v1909_v1  ;;  %v1764_v49 = vld [vmem:[%s2460_s7 + $0x18] ss:$12 sps:$4 sm:$0xff]   ;;  %v1770_v54 = vld [vmem:[%s2460_s7 + $0x48] ss:$12 sps:$4 sm:$0xff]   ;;  %v1773_v56 = vld [vmem:[%s2460_s7 + $0x60] ss:$12 sps:$4 sm:$0xff]  }
  0x1a   : > { %672 = vmatpush1.bf16.msra.mxu0 %v1737_v11  ;;  %703 = vmatprep.mubr.bf16.mxu0 %v1911_v45  ;;  %v1772_v53 = vld [vmem:[%s2460_s7 + $0x4c] ss:$12 sps:$4 sm:$0xff]   ;;  %v1775_v55 = vld [vmem:[%s2460_s7 + $0x64] ss:$12 sps:$4 sm:$0xff]   ;;  %v1778_v57 = vld [vmem:[%s2460_s7 + $0x7c] ss:$12 sps:$4 sm:$0xff]  }
  0x1b   : > { %673 = vmatprep.subr.bf16.mxu0 %v1742_v31  ;;  %v1776_v58 = vld [vmem:[%s2460_s7 + $0x78] ss:$12 sps:$4 sm:$0xff]   ;;  %v1781_v59 = vld [vmem:[%s2460_s7 + $0x94] ss:$12 sps:$4 sm:$0xff]   ;;  %v1779_v60 = vld [vmem:[%s2460_s7 + $0x90] ss:$12 sps:$4 sm:$0xff]  }
  0x1c   : > { %1632 = vmatpush3.bf16.msra.mxu1 %v1732_v6  ;;  %v1784_v61 = vld [vmem:[%s2460_s7 + $0xac] ss:$12 sps:$4 sm:$0xff]   ;;  %v1782_v62 = vld [vmem:[%s2460_s7 + $0xa8] ss:$12 sps:$4 sm:$0xff]   ;;  %v1787_v63 = vld [vmem:[%s2460_s7 + $0xc4] ss:$12 sps:$4 sm:$0xff]  }
  0x1d   : > { %1633 = vmatprep.subr.bf16.mxu1 %v1909_v1  ;;  %v1785_v0 = vld [vmem:[%s2460_s7 + $0xc0] ss:$12 sps:$4 sm:$0xff]   ;;  %v1804_v31 = vld [vmem:[%s2460_s7 + $0x50] ss:$12 sps:$4 sm:$0xff]   ;;  %s2327_s11 = scalar_lea.vmem [#allocation2], %s1677_s30  ;;  %vm1373_vm5 = vcmask 785408  }
  0x1e   : > { %674 = vmatpush1.bf16.msra.mxu0 %v1740_v32  ;;  %v1807_v32 = vld [vmem:[%s2460_s7 + $0x124] ss:$12 sps:$4 sm:$0xff]   ;;  %s1678_s27 = smul.u32 768, %s1995_s17  ;;  %s1397_s29 = sshll.u32 %s2327_s11, 4  ;;  %s2407_s29 = int_to_ptr.vmem [resolvable:$true] %s1397_s29 }
  0x1f   : > { %675 = vmatprep.subr.bf16.mxu0 %v1745_v33  ;;  %v1808_v33 = vld [vmem:[%s2460_s7 + $0x128] ss:$12 sps:$4 sm:$0xff]   ;;  %v1823_v45 = vld [vmem:[%s2460_s7 + $0x170] ss:$12 sps:$4 sm:$0xff]   ;;  %s2467_s17 = sand.u32 1, %s1899_s14  }
  0x20   : > { %1634 = vmatpush3.bf16.msra.mxu1 %v1733_v7  ;;  %s2405_s12 = scalar_lea.hbm %s2463_s10, %s1678_s27  ;;  %s2412_s18 = scalar_lea.sflag [#allocation3], %s2467_s17 }
  0x21   : > { %1635 = vmatprep.subr.bf16.mxu1 %v1909_v1 }
  0x22   : > { %676 = vmatpush1.bf16.msra.mxu0 %v1743_v34  ;;  %v1805_v34 = vld [vmem:[%s2460_s7 + $0x120] ss:$12 sps:$4 sm:$0xff]  }
  0x23   : > { %677 = vmatprep.subr.bf16.mxu0 %v1748_v35  ;;  %v1809_v35 = vld [vmem:[%s2460_s7 + $0x68] ss:$12 sps:$4 sm:$0xff]  }
  0x24   : > { %1636 = vmatpush3.bf16.msra.mxu1 %v1734_v8 }
  0x25   : > { %1637 = vmatprep.subr.bf16.mxu1 %v1909_v1 }
  0x26   : > { %678 = vmatpush1.bf16.msra.mxu0 %v1746_v36  ;;  %v1812_v36 = vld [vmem:[%s2460_s7 + $0x13c] ss:$12 sps:$4 sm:$0xff]  }
  0x27   : > { %679 = vmatprep.subr.bf16.mxu0 %v1751_v37  ;;  %v1813_v37 = vld [vmem:[%s2460_s7 + $0x140] ss:$12 sps:$4 sm:$0xff]  }
  0x28   : > { %1638 = vmatpush3.bf16.msra.mxu1 %v1735_v9 }
  0x29   : > { %1639 = vmatprep.subr.bf16.mxu1 %v1909_v1  ;;  %v1469_v1 = vld [vmem:[%s2457_s4] ss:$0 sm:$0xff] }
  0x2a   : > { %680 = vmatpush1.bf16.msra.mxu0 %v1749_v38  ;;  %v1810_v38 = vld [vmem:[%s2460_s7 + $0x138] ss:$12 sps:$4 sm:$0xff]  }
  0x2b   : > { %681 = vmatprep.subr.bf16.mxu0 %v1754_v39  ;;  %v1814_v39 = vld [vmem:[%s2460_s7 + $0x80] ss:$12 sps:$4 sm:$0xff]  }
  0x2c   : > { %1640 = vmatpush3.bf16.msra.mxu1 %v1736_v10 }
  0x2d   : > { %1073 = vmatprep.subr.bf16.mxu1 %v1763_v47  ;;  %v1824_v47 = vld [vmem:[%s2460_s7 + $0xb0] ss:$12 sps:$4 sm:$0xff]  }
  0x2e   : > { %682 = vmatpush1.bf16.msra.mxu0 %v1752_v40  ;;  %v1817_v40 = vld [vmem:[%s2460_s7 + $0x154] ss:$12 sps:$4 sm:$0xff]  }
  0x2f   : > { %683 = vmatprep.subr.bf16.mxu0 %v1757_v41  ;;  %v1818_v41 = vld [vmem:[%s2460_s7 + $0x158] ss:$12 sps:$4 sm:$0xff]  }
  0x32   : > { %684 = vmatpush1.bf16.msra.mxu0 %v1755_v42  ;;  %v1815_v42 = vld [vmem:[%s2460_s7 + $0x150] ss:$12 sps:$4 sm:$0xff]  }
  0x33   : > { %685 = vmatprep.subr.bf16.mxu0 %v1760_v43  ;;  %v1819_v43 = vld [vmem:[%s2460_s7 + $0x98] ss:$12 sps:$4 sm:$0xff]  }
  0x36   : > { %686 = vmatpush1.bf16.msra.mxu0 %v1758_v44  ;;  %v1822_v44 = vld [vmem:[%s2460_s7 + $0x16c] ss:$12 sps:$4 sm:$0xff]  }
  0x37   : > { %1559 = vmatprep.subr.bf16.mxu0 %v1788_v51  ;;  %v579_v51 = vld [vmem:[%s2459_s6] sm:$0x3] }
  0xec   : > { %v422_v14 = vpop.f32.mrb[0].mxu0 }
  0xed   : > { %v423_v15 = vadd.f32 %v1465_v13, %v422_v14  ;;  %v1623_v16 = vpop.f32.mrb[1].mxu0 }
  0xee   : > { %v425_v17 = vpop.f32.mrb[2].mxu0 }
  0xef   : > { %v426_v18 = vadd.f32 %v1465_v13, %v425_v17  ;;  %v1624_v19 = vpop.f32.mrb[3].mxu0  ;;  %v429_v20 = vmul.f32 0.5, %v423_v15 }
  0xf0   : > { %v1789_v19 = vld [vmem:[%s2460_s7 + $0x8] ss:$12 sps:$4 sm:$0xff]  }
  0xf1   : > { %v430_v21 = vmul.f32 0.5, %v426_v18 }
  0xf3   : > { %v431_v22 = vpack.c.bf16 %v430_v21, %v429_v20 }
  0xf5   : > { %1825 = vtanh.bf16 %v431_v22  ;;  %v1790_v22 = vld [vmem:[%s2460_s7 + $0xd8] ss:$12 sps:$4 sm:$0xff]  }
 0x100   : > { %v1826_v23 = vpop.eup %1825 }
 0x101   : > { %v434_v24 = vunpack.c.h.bf16 %v1826_v23  ;;  %v433_v25 = vunpack.c.l.bf16 %v1826_v23  ;;  %v1794_v23 = vld [vmem:[%s2460_s7 + $0x20] ss:$12 sps:$4 sm:$0xff]  }
 0x103   : > { %v436_v26 = vadd.f32 1.0, %v434_v24  ;;  %v435_v27 = vadd.f32 1.0, %v433_v25  ;;  %v1797_v24 = vld [vmem:[%s2460_s7 + $0xf4] ss:$12 sps:$4 sm:$0xff]   ;;  %v1798_v25 = vld [vmem:[%s2460_s7 + $0xf8] ss:$12 sps:$4 sm:$0xff]  }
 0x105   : > { %v438_v28 = vmul.f32 %v436_v26, %v430_v21  ;;  %v437_v29 = vmul.f32 %v435_v27, %v429_v20  ;;  %v1792_v20 = vld [vmem:[%s2460_s7 + $0xdc] ss:$12 sps:$4 sm:$0xff]   ;;  %v1793_v21 = vld [vmem:[%s2460_s7 + $0xe0] ss:$12 sps:$4 sm:$0xff]   ;;  %v1799_v27 = vld [vmem:[%s2460_s7 + $0x38] ss:$12 sps:$4 sm:$0xff]  }
 0x106   : > { %v1795_v26 = vld [vmem:[%s2460_s7 + $0xf0] ss:$12 sps:$4 sm:$0xff]  }
 0x107   : > { %v439_v30 = vpack.c.bf16 %v438_v28, %v437_v29  ;;  %v1802_v28 = vld [vmem:[%s2460_s7 + $0x10c] ss:$12 sps:$4 sm:$0xff]   ;;  %v1803_v29 = vld [vmem:[%s2460_s7 + $0x110] ss:$12 sps:$4 sm:$0xff]  }
 0x109   : > { %1642 = vmatmul.mubr.bf16.vlgmr.msra.gmra.mrb[0].mxu1 %v439_v30  ;;  %v1800_v30 = vld [vmem:[%s2460_s7 + $0x108] ss:$12 sps:$4 sm:$0xff]  }
 0x10a   : > { %1074 = vmatpush1.bf16.msra.mxu1 %v1761_v46  ;;  %v1820_v46 = vld [vmem:[%s2460_s7 + $0x168] ss:$12 sps:$4 sm:$0xff]  }
 0x10b   : > { %1075 = vmatprep.subr.bf16.mxu1 %v1766_v48  ;;  %v581_v48 = vlaneseq }
 0x10e   : > { %1076 = vmatpush1.bf16.msra.mxu1 %v1764_v49  ;;  %v2252_v49 = vshrl.u32 %v581_v48, 7 }
 0x10f   : > { %1077 = vmatprep.subr.bf16.mxu1 %v1769_v50 }
 0x110   : > { %v583_v50 = vsub.s32 0, %v2252_v49 }
 0x112   : > { %1078 = vmatpush1.bf16.msra.mxu1 %v1767_v52  ;;  %v587_v52 = vsub.s32 1, %v2252_v49 }
 0x113   : > { %1079 = vmatprep.subr.bf16.mxu1 %v1772_v53  ;;  %v584_v53 = vrot.slane %v579_v51, %v583_v50 }
 0x116   : > { %1080 = vmatpush1.bf16.msra.mxu1 %v1770_v54  ;;  %v588_v54 = vrot.slane %v579_v51, %v587_v52 }
 0x117   : > { %1081 = vmatprep.subr.bf16.mxu1 %v1775_v55 }
 0x11a   : > { %1082 = vmatpush1.bf16.msra.mxu1 %v1773_v56 }
 0x11b   : > { %1083 = vmatprep.subr.bf16.mxu1 %v1778_v57 }
 0x11e   : > { %1084 = vmatpush1.bf16.msra.mxu1 %v1776_v58 }
 0x11f   : > { %1085 = vmatprep.subr.bf16.mxu1 %v1781_v59 }
 0x122   : > { %1086 = vmatpush1.bf16.msra.mxu1 %v1779_v60 }
 0x123   : > { %1087 = vmatprep.subr.bf16.mxu1 %v1784_v61 }
 0x126   : > { %1088 = vmatpush1.bf16.msra.mxu1 %v1782_v62 }
 0x127   : > { %1089 = vmatprep.subr.bf16.mxu1 %v1787_v63 }
 0x12a   : > { %1090 = vmatpush1.bf16.msra.mxu1 %v1785_v0 }
 0x12b   : > { %1091 = vmatprep.subr.bf16.mxu1 %v1792_v20 }
 0x12e   : > { %1092 = vmatpush1.bf16.msra.mxu1 %v1790_v22  ;;  %v1192_v22 = vld [vmem:[%s2462_s9 + $0x88] sm:$0xff] }
 0x12f   : > { %1093 = vmatprep.subr.bf16.mxu1 %v1797_v24 }
 0x132   : > { %1094 = vmatpush1.bf16.msra.mxu1 %v1795_v26  ;;  %v1193_v26 = vld [vmem:[%s2462_s9 + $0x90] sm:$0xff] }
 0x133   : > { %1095 = vmatprep.subr.bf16.mxu1 %v1802_v28 }
 0x136   : > { %1096 = vmatpush1.bf16.msra.mxu1 %v1800_v30  ;;  %v1177_v30 = vld [vmem:[%s2462_s9 + $0x10] sm:$0xff] }
 0x137   : > { %1097 = vmatprep.subr.bf16.mxu1 %v1807_v32  ;;  %v1195_v32 = vld [vmem:[%s2462_s9 + $0xa0] sm:$0xff] }
 0x13a   : > { %1098 = vmatpush1.bf16.msra.mxu1 %v1805_v34 }
 0x13b   : > { %1099 = vmatprep.subr.bf16.mxu1 %v1812_v36  ;;  %v1179_v36 = vld [vmem:[%s2462_s9 + $0x20] sm:$0xff] }
 0x13e   : > { %1100 = vmatpush1.bf16.msra.mxu1 %v1810_v38  ;;  %v1197_v38 = vld [vmem:[%s2462_s9 + $0xb0] sm:$0xff] }
 0x13f   : > { %1101 = vmatprep.subr.bf16.mxu1 %v1817_v40 }
 0x142   : > { %1102 = vmatpush1.bf16.msra.mxu1 %v1815_v42  ;;  %v1181_v42 = vld [vmem:[%s2462_s9 + $0x30] sm:$0xff] }
 0x143   : > { %1103 = vmatprep.subr.bf16.mxu1 %v1822_v44 }
 0x146   : > { %1104 = vmatpush1.bf16.msra.mxu1 %v1820_v46 }
 0x1dc   : > { %v545_v2 = vpop.f32.mrb[0].mxu1 }
 0x1dd   : > { %v546_v3 = vadd.f32 %v1469_v1, %v545_v2  ;;  %v1643_v4 = vpop.f32.mrb[1].mxu1 }
 0x1de   : > { %v548_v5 = vpop.f32.mrb[2].mxu1 }
 0x1df   : > { %v549_v6 = vadd.f32 %v1469_v1, %v548_v5  ;;  %v1644_v7 = vpop.f32.mrb[3].mxu1  ;;  %v552_v8 = vmul.f32 0.5, %v546_v3 }
 0x1e1   : > { %v553_v9 = vmul.f32 0.5, %v549_v6 }
 0x1e3   : > { %v554_v10 = vpack.c.bf16 %v553_v9, %v552_v8 }
 0x1e5   : > { %1827 = vtanh.bf16 %v554_v10 }
 0x1f0   : > { %v1828_v11 = vpop.eup %1827 }
 0x1f1   : > { %v556_v12 = vunpack.c.l.bf16 %v1828_v11  ;;  %v557_v13 = vunpack.c.h.bf16 %v1828_v11 }
 0x1f3   : > { %v558_v14 = vadd.f32 1.0, %v556_v12  ;;  %v559_v15 = vadd.f32 1.0, %v557_v13 }
 0x1f5   : > { %v560_v16 = vmul.f32 %v558_v14, %v552_v8  ;;  %v561_v17 = vmul.f32 %v559_v15, %v553_v9 }
 0x1f7   : > { %v562_v18 = vpack.c.bf16 %v561_v17, %v560_v16 }
 0x1f9   : > { %704 = vmatmul.mubr.bf16.vlgmr.msra.gmra.mrb[4].mxu0 %v562_v18 }
 0x1fa   : > { %1560 = vmatpush3.bf16.msra.mxu0 %v1789_v19 }
 0x1fb   : > { %1561 = vmatprep.subr.bf16.mxu0 %v1793_v21  ;;  %v1191_v21 = vld [vmem:[%s2462_s9 + $0x80] sm:$0xff] }
 0x1fc   : > { %v1645_v24 = vpack.c.bf16 %v1192_v22, %v1191_v21  ;;  %v1206_v21 = vld [vmem:[%s2462_s9 + $0xf8] sm:$0xff]  ;;  %v1189_v22 = vld [vmem:[%s2462_s9 + $0x70] sm:$0xff] }
 0x1fe   : > { %1562 = vmatpush3.bf16.msra.mxu0 %v1794_v23  ;;  %v1175_v23 = vld [vmem:[%s2462_s9] sm:$0xff] }
 0x1ff   : > { %1563 = vmatprep.subr.bf16.mxu0 %v1798_v25  ;;  %v1176_v25 = vld [vmem:[%s2462_s9 + $0x8] sm:$0xff] }
 0x200   : > { %v1647_v28 = vpack.c.bf16 %v1176_v25, %v1175_v23 }
 0x202   : > { %1564 = vmatpush3.bf16.msra.mxu0 %v1799_v27  ;;  %v1194_v27 = vld [vmem:[%s2462_s9 + $0x98] sm:$0xff] }
 0x203   : > { %1565 = vmatprep.subr.bf16.mxu0 %v1803_v29  ;;  %v1649_v29 = vpack.c.bf16 %v1194_v27, %v1193_v26 }
 0x206   : > { %1566 = vmatpush3.bf16.msra.mxu0 %v1804_v31  ;;  %v1178_v31 = vld [vmem:[%s2462_s9 + $0x18] sm:$0xff] }
 0x207   : > { %1567 = vmatprep.subr.bf16.mxu0 %v1808_v33  ;;  %v1196_v33 = vld [vmem:[%s2462_s9 + $0xa8] sm:$0xff]  ;;  %v1651_v34 = vpack.c.bf16 %v1178_v31, %v1177_v30 }
 0x20a   : > { %1568 = vmatpush3.bf16.msra.mxu0 %v1809_v35  ;;  %v1653_v35 = vpack.c.bf16 %v1196_v33, %v1195_v32 }
 0x20b   : > { %1569 = vmatprep.subr.bf16.mxu0 %v1813_v37  ;;  %v1180_v37 = vld [vmem:[%s2462_s9 + $0x28] sm:$0xff] }
 0x20c   : > { %v1655_v40 = vpack.c.bf16 %v1180_v37, %v1179_v36 }
 0x20e   : > { %1570 = vmatpush3.bf16.msra.mxu0 %v1814_v39  ;;  %v1198_v39 = vld [vmem:[%s2462_s9 + $0xb8] sm:$0xff] }
 0x20f   : > { %1571 = vmatprep.subr.bf16.mxu0 %v1818_v41  ;;  %v1657_v41 = vpack.c.bf16 %v1198_v39, %v1197_v38 }
 0x212   : > { %1572 = vmatpush3.bf16.msra.mxu0 %v1819_v43  ;;  %v1182_v43 = vld [vmem:[%s2462_s9 + $0x38] sm:$0xff] }
 0x213   : > { %1573 = vmatprep.subr.bf16.mxu0 %v1823_v45  ;;  %v1659_v44 = vpack.c.bf16 %v1182_v43, %v1181_v42  ;;  %v2315_v45 = vld [vmem:[%s2461_s8] sm:$0x7]  ;;  %v1912_v42 = vmov 1.0  }
 0x214   : > { %v805_v46 = vrot.slane %v2315_v45, %v583_v50 }
 0x216   : > { %1574 = vmatpush3.bf16.msra.mxu0 %v1824_v47  ;;  %v809_v47 = vrot.slane %v2315_v45, %v587_v52 }
 0x217   : > { %1646 = vmatprep.subr.bf16.mxu0 %v1645_v24  ;;  %v1190_v24 = vld [vmem:[%s2462_s9 + $0x78] sm:$0xff] }
 0x218   : > { %v1675_v25 = vpack.c.bf16 %v1190_v24, %v1189_v22 }
 0x2cc   : > { %v705_v55 = vpop.f32.mrb[4].mxu0 }
 0x2cd   : > { %v706_v56 = vadd.f32 %v705_v55, %v584_v53  ;;  %v707_v57 = vpop.f32.mrb[5].mxu0 }
 0x2ce   : > { %v708_v58 = vadd.f32 %v707_v57, %v588_v54  ;;  %v709_v59 = vpop.f32.mrb[6].mxu0 }
 0x2cf   : > { %v710_v60 = vadd.f32 %v709_v59, %v584_v53  ;;  %v711_v61 = vpop.f32.mrb[7].mxu0  ;;  %v714_v63 = vmul.f32 0.5, %v706_v56 }
 0x2d0   : > { %v712_v62 = vadd.f32 %v711_v61, %v588_v54  ;;  %v715_v1 = vmul.f32 0.5, %v708_v58 }
 0x2d1   : > { %v716_v0 = vmul.f32 0.5, %v710_v60 }
 0x2d2   : > { %v717_v2 = vmul.f32 0.5, %v712_v62 }
 0x2d3   : > { %v718_v3 = vpack.c.bf16 %v716_v0, %v714_v63 }
 0x2d4   : > { %v719_v4 = vpack.c.bf16 %v717_v2, %v715_v1 }
 0x2d5   : > { %1829 = vtanh.bf16 %v718_v3  ;;  %v1200_v3 = vld [vmem:[%s2462_s9 + $0xc8] sm:$0xff] }
 0x2d6   : > { %1831 = vtanh.bf16 %v719_v4 }
 0x2e0   : > { %v1830_v5 = vpop.eup %1829 }
 0x2e1   : > { %v1832_v6 = vpop.eup %1831  ;;  %v722_v7 = vunpack.c.l.bf16 %v1830_v5  ;;  %v724_v8 = vunpack.c.h.bf16 %v1830_v5  ;;  %v1183_v5 = vld [vmem:[%s2462_s9 + $0x40] sm:$0xff] }
 0x2e2   : > { %v725_v9 = vunpack.c.h.bf16 %v1832_v6  ;;  %v723_v10 = vunpack.c.l.bf16 %v1832_v6  ;;  %v1184_v6 = vld [vmem:[%s2462_s9 + $0x48] sm:$0xff] }
 0x2e3   : > { %v726_v11 = vadd.f32 1.0, %v722_v7  ;;  %v728_v12 = vadd.f32 1.0, %v724_v8  ;;  %v1663_v7 = vpack.c.bf16 %v1184_v6, %v1183_v5  ;;  %v1201_v8 = vld [vmem:[%s2462_s9 + $0xd0] sm:$0xff] }
 0x2e4   : > { %v729_v13 = vadd.f32 1.0, %v725_v9  ;;  %v727_v14 = vadd.f32 1.0, %v723_v10  ;;  %v1202_v9 = vld [vmem:[%s2462_s9 + $0xd8] sm:$0xff] }
 0x2e5   : > { %v730_v15 = vmul.f32 %v726_v11, %v714_v63  ;;  %v732_v16 = vmul.f32 %v728_v12, %v716_v0  ;;  %v1665_v10 = vpack.c.bf16 %v1202_v9, %v1201_v8  ;;  %v1185_v11 = vld [vmem:[%s2462_s9 + $0x50] sm:$0xff]  ;;  %v1186_v12 = vld [vmem:[%s2462_s9 + $0x58] sm:$0xff] }
 0x2e6   : > { %v733_v17 = vmul.f32 %v729_v13, %v717_v2  ;;  %v731_v18 = vmul.f32 %v727_v14, %v715_v1  ;;  %v1199_v2 = vld [vmem:[%s2462_s9 + $0xc0] sm:$0xff]  ;;  %v1667_v13 = vpack.c.bf16 %v1186_v12, %v1185_v11 }
 0x2e7   : > { %v734_v19 = vpack.c.bf16 %v732_v16, %v730_v15  ;;  %v1661_v4 = vpack.c.bf16 %v1200_v3, %v1199_v2  ;;  %v1203_v14 = vld [vmem:[%s2462_s9 + $0xe0] sm:$0xff]  ;;  %v1204_v15 = vld [vmem:[%s2462_s9 + $0xe8] sm:$0xff]  ;;  %v1304_v2 = vstv %s1542_s25 }
 0x2e8   : > { %v735_v20 = vpack.c.bf16 %v733_v17, %v731_v18  ;;  %v1669_v16 = vpack.c.bf16 %v1204_v15, %v1203_v14  ;;  %v1187_v17 = vld [vmem:[%s2462_s9 + $0x60] sm:$0xff]  ;;  %v1188_v18 = vld [vmem:[%s2462_s9 + $0x68] sm:$0xff] }
 0x2ea   : > { %1105 = vmatprep.mubr.bf16.mxu1 %v735_v20  ;;  %1148 = vmatprep.mubr.bf16.mxu0 %v735_v20  ;;  %v1205_v20 = vld [vmem:[%s2462_s9 + $0xf0] sm:$0xff] }
 0x2eb   : > { %1106 = vmatmul.mubr.bf16.vlgmr.msra.gmra.mrb[4].mxu1 %v734_v19  ;;  %1149 = vmatmul.mubr.bf16.vlgmr.msra.gmra.mrb[8].mxu0 %v734_v19  ;;  %v1671_v19 = vpack.c.bf16 %v1188_v18, %v1187_v17  ;;  %v1673_v23 = vpack.c.bf16 %v1206_v21, %v1205_v20 }
 0x2ec   : > { %1648 = vmatpush3.bf16.msra.mxu0 %v1647_v28 }
 0x2ed   : > { %1650 = vmatprep.subr.bf16.mxu0 %v1649_v29 }
 0x2f0   : > { %1652 = vmatpush3.bf16.msra.mxu0 %v1651_v34 }
 0x2f1   : > { %1654 = vmatprep.subr.bf16.mxu0 %v1653_v35 }
 0x2f4   : > { %1656 = vmatpush3.bf16.msra.mxu0 %v1655_v40  ;;  %v2384_v40 = vand.u32 127, %v581_v48 }
 0x2f5   : > { %1658 = vmatprep.subr.bf16.mxu0 %v1657_v41 }
 0x2f6   : > { %v1300_v41 = vand.u32 3, %v2384_v40  ;;  %v1299_v3 = vshra.s32 %v2384_v40, 2  ;;  %v812_v40 = vsub.s32 2, %v2252_v49 }
 0x2f8   : > { %1660 = vmatpush3.bf16.msra.mxu0 %v1659_v44  ;;  %vm1343_vm2 = vcmp.lt.s32.totalorder %v1300_v41, 2 }
 0x2f9   : > { %1662 = vmatprep.subr.bf16.mxu0 %v1661_v4  ;;  %v1344_v43 = vsel %vm1343_vm2, -1.0, %v1912_v42 }
 0x2fa   : > { %v1345_v44 = vmul.f32 8.0, %v1344_v43 }
 0x2fc   : > { %1664 = vmatpush3.bf16.msra.mxu0 %v1663_v7 }
 0x2fd   : > { %1666 = vmatprep.subr.bf16.mxu0 %v1665_v10 }
 0x300   : > { %1668 = vmatpush3.bf16.msra.mxu0 %v1667_v13 }
 0x301   : > { %1670 = vmatprep.subr.bf16.mxu0 %v1669_v16 }
 0x304   : > { %1672 = vmatpush3.bf16.msra.mxu0 %v1671_v19 }
 0x305   : > { %1674 = vmatprep.subr.bf16.mxu0 %v1673_v23 }
 0x308   : > { %1676 = vmatpush3.bf16.msra.mxu0 %v1675_v25 }
 0x3be   : > { %v1107_v51 = vpop.f32.mrb[4].mxu1  ;;  %v1575_v53 = vpop.f32.mrb[8].mxu0 }
 0x3bf   : > { %v1108_v54 = vadd.f32 %v1107_v51, %v805_v46  ;;  %v1109_v55 = vpop.f32.mrb[5].mxu1  ;;  %v1576_v56 = vpop.f32.mrb[9].mxu0 }
 0x3c0   : > { %v1110_v57 = vadd.f32 %v1109_v55, %v809_v47  ;;  %v2325_v58 = vadd.f32 %v1576_v56, %v1575_v53  ;;  %v1111_v59 = vpop.f32.mrb[6].mxu1  ;;  %v1578_v60 = vpop.f32.mrb[10].mxu0 }
 0x3c1   : > { %1376 = vst [vmem:[%s2327_s11] sm:$0xff] %v1108_v54  ;;  %v1112_v50 = vadd.f32 %v1111_v59, %v805_v46  ;;  %v1113_v61 = vpop.f32.mrb[7].mxu1  ;;  %v1579_v52 = vpop.f32.mrb[11].mxu0 }
 0x3c2   : > { %1377 = vst [vmem:[%s2327_s11 + $0x8] sm:$0xff] %v1110_v57  ;;  %v1114_v62 = vadd.f32 %v1113_v61, %v809_v47  ;;  %v2331_v63 = vadd.f32 %v1579_v52, %v1578_v60  ;;  %v1157_v0 = vmax.f32 %v1108_v54, %v1110_v57 }
 0x3c3   : > { %1379 = vst [vmem:[%s2327_s11 + $0x18] sm:$0xff] %v1112_v50 }
 0x3c4   : > { %1380 = vst [vmem:[%s2327_s11 + $0x20] sm:$0xff] %v1114_v62  ;;  %1158 = vmax.xlane.f32.xlu0 %v1157_v0  ;;  %v1160_v1 = vmax.f32 %v1112_v50, %v1114_v62  ;;  %v1302_v0 = vmul.u32 4, %v2252_v49 }
 0x3c6   : > { %v1305_v4 = vadd.s32 %v1304_v2, %v1302_v0 }
 0x3c8   : > { %1161 = vmax.xlane.f32.xlu0 %v1160_v1  ;;  %v1298_v1 = vadd.s32 8, %v2252_v49  ;;  %v1307_v6 = vadd.s32 %v1305_v4, %v1299_v3 }
 0x3ca   : > { %v1303_v5 = vmul.u32 4, %v1298_v1  ;;  %v1309_v8 = vcvt.s32.f32 %v1307_v6 }
 0x3cc   : > { %v1306_v7 = vadd.s32 %v1304_v2, %v1303_v5  ;;  %v1311_v10 = vadd.f32 0.5, %v1309_v8 }
 0x3ce   : > { %v1308_v9 = vadd.s32 %v1306_v7, %v1299_v3  ;;  %v1313_v12 = vmul.f32 0.015625, %v1311_v10 }
 0x3d0   : > { %v1310_v11 = vcvt.s32.f32 %v1308_v9  ;;  %v1315_v14 = vfloor.f32 %v1313_v12 }
 0x3d2   : > { %v1312_v13 = vadd.f32 0.5, %v1310_v11  ;;  %v1317_v16 = vmul.f32 64.0, %v1315_v14 }
 0x3d4   : > { %v1314_v15 = vmul.f32 0.015625, %v1312_v13  ;;  %v1319_v18 = vsub.f32 %v1309_v8, %v1317_v16 }
 0x3d6   : > { %v1316_v17 = vfloor.f32 %v1314_v15  ;;  %v1321_v20 = vadd.f32 0.5, %v1319_v18 }
 0x3d8   : > { %v1318_v19 = vmul.f32 64.0, %v1316_v17  ;;  %v1323_v22 = vmul.f32 0.125, %v1321_v20 }
 0x3da   : > { %v1320_v21 = vsub.f32 %v1310_v11, %v1318_v19  ;;  %v1325_v24 = vfloor.f32 %v1323_v22 }
 0x3dc   : > { %v1322_v23 = vadd.f32 0.5, %v1320_v21 }
 0x3de   : > { %1347 = vrot.lane.b32.xlu0 %v1345_v44, %s1913_s20  ;;  %v1324_v25 = vmul.f32 0.125, %v1322_v23 }
 0x451   : > { %v1159_v26 = vpop.xlane.xlu0 %1158 }
 0x452   : > { %v1163_v27 = vsub.f32 %v1108_v54, %v1159_v26  ;;  %v1164_v28 = vsub.f32 %v1110_v57, %v1159_v26  ;;  %v1327_v26 = vmul.f32 8.0, %v1325_v24 }
 0x454   : > { %v1167_v29 = vmul.f32 1.442695, %v1163_v27  ;;  %v1169_v30 = vmul.f32 1.442695, %v1164_v28  ;;  %v1326_v27 = vfloor.f32 %v1324_v25  ;;  %v1329_v28 = vsub.f32 %v1319_v18, %v1327_v26 }
 0x455   : > { %v1162_v31 = vpop.xlane.xlu0 %1161 }
 0x456   : > { %1833 = vpow2.f32 %v1167_v29  ;;  %v1165_v32 = vsub.f32 %v1112_v50, %v1162_v31  ;;  %v1166_v33 = vsub.f32 %v1114_v62, %v1162_v31  ;;  %v1328_v29 = vmul.f32 8.0, %v1326_v27 }
 0x457   : > { %1835 = vpow2.f32 %v1169_v30  ;;  %v1331_v30 = vadd.f32 0.5, %v1329_v28  ;;  %v1335_v31 = vadd.f32 0.5, %v1325_v24 }
 0x458   : > { %v1171_v34 = vmul.f32 1.442695, %v1165_v32  ;;  %v1173_v35 = vmul.f32 1.442695, %v1166_v33  ;;  %v1330_v32 = vsub.f32 %v1320_v21, %v1328_v29  ;;  %v1339_v33 = vand.u32 1, %v1300_v41 }
 0x459   : > { %v1348_v59 = vpop.permute.xlu0 %1347  ;;  %v813_v41 = vrot.slane %v2315_v45, %v812_v40 }
 0x45a   : > { %1837 = vpow2.f32 %v1171_v34  ;;  %v1333_v34 = vmul.f32 8.0, %v1331_v30  ;;  %vm1340_vm3 = vcmp.eq.s32.totalorder %v1339_v33, 0 }
 0x45b   : > { %1839 = vpow2.f32 %v1173_v35  ;;  %v1337_v35 = vmul.f32 8.0, %v1335_v31 }
 0x460   : > { %v1834_v36 = vpop.eup %1833 }
 0x461   : > { %v1836_v37 = vpop.eup %1835 }
 0x462   : > { %1271 = vmatprep.mubr.f32.mxu0 %v1836_v37  ;;  %v1336_v37 = vadd.f32 0.5, %v1326_v27 }
 0x463   : > { %1272 = vmatmul.mubr.f32.vlgmr.msra.gmra.mrb[12].mxu0 %v1834_v36  ;;  %v1332_v36 = vadd.f32 0.5, %v1330_v32 }
 0x464   : > { %v1838_v38 = vpop.eup %1837  ;;  %v1338_v42 = vmul.f32 8.0, %v1336_v37 }
 0x465   : > { %v1840_v39 = vpop.eup %1839 }
 0x466   : > { %1276 = vmatprep.mubr.f32.mxu0 %v1840_v39  ;;  %v1334_v39 = vmul.f32 8.0, %v1332_v36 }
 0x467   : > { %1277 = vmatmul.mubr.f32.gmra.mrb[14].mxu0 %v1838_v38  ;;  %v1341_v38 = vsel %vm1340_vm3, %v1333_v34, %v1337_v35 }
 0x536   : > { %v1613_v46 = vpop.f32.mrb[12].mxu0 }
 0x537   : > { %v1614_v47 = vpop.f32.mrb[13].mxu0 }
 0x538   : > { %v1615_v51 = vadd.f32 %v1614_v47, %v1613_v46  ;;  %v1342_v46 = vsel %vm1340_vm3, %v1334_v39, %v1338_v42 }
 0x53a   : > { %1841 = vrcp.f32 %v1615_v51  ;;  %v1616_v53 = vpop.f32.mrb[14].mxu0 }
 0x53b   : > { %v1617_v54 = vpop.f32.mrb[15].mxu0 }
 0x53c   : > { %v1618_v55 = vadd.f32 %v1617_v54, %v1616_v53  ;;  %v1151_v53 = vadd.f32 %v2325_v58, %v813_v41 }
 0x53e   : > { %1843 = vrcp.f32 %v1618_v55 }
 0x544   : > { %v1842_v48 = vpop.eup %1841 }
 0x545   : > { %1286 = vrot.lane.b32.xlu1 %v1842_v48, %s1913_s20 }
 0x548   : > { %v1844_v56 = vpop.eup %1843 }
 0x549   : > { %1288 = vrot.lane.b32.xlu1 %v1844_v56, %s1913_s20  ;;  %v1154_v56 = vadd.f32 %v2331_v63, %v813_v41  ;;  %s1845_s20 = scalar_lea.vmem %s2407_s29, 768 }
 0x54a   : > { %p1846_p11 = scmp.ne.s32.totalorder %s2407_s29, %s1845_s20 }
 0x54c   : > { %p1847_p12 = pnand %p1846_p11, %p2012_p5 }
 0x54e   : > { %p1848_p13 = pneg %p1847_p12 }
 0x5b7   : > { %v1287_v57 = vpop.permute.xlu1 %1286 }
 0x5b8   : > { %v1292_v60 = vmul.f32 %v1615_v51, %v1287_v57 }
 0x5ba   : > { %v1350_v50 = vmul.f32 %v1348_v59, %v1292_v60 }
 0x5bb   : > { %v1289_v61 = vpop.permute.xlu1 %1288 }
 0x5bc   : > { %v1293_v52 = vmul.f32 %v1618_v55, %v1289_v61  ;;  %1354 = vrot.lane.b32.xlu1 %v1350_v50, %s1914_s21 }
 0x5be   : > { %v1351_v62 = vmul.f32 %v1348_v59, %v1293_v52 }
 0x5c0   : > { %1356 = vrot.lane.b32.xlu1 %v1351_v62, %s1914_s21  ;;  %s1916_s21 = smov [#allocation2]  }
 0x5c1   : > { %s1849_s25 = sshll.u32 %s1916_s21, 4  ;;  %s1850_s25 = int_to_ptr.vmem [resolvable:$false] %s1849_s25 }
 0x5c2   : > { %p1852_p0 = scmp.lt.s32.totalorder %s2407_s29, %s1850_s25 }
 0x62e   : > { %v1355_v43 = vpop.permute.xlu1 %1354 }
 0x62f   : > { %v1360_v44 = vadd.f32 %v1355_v43, %v1341_v38 }
 0x631   : > { %1364 = vrot.lane.b32.xlu1 %v1360_v44, %s1915_s26 }
 0x632   : > { %v1357_v47 = vpop.permute.xlu1 %1356 }
 0x633   : > { %v1361_v51 = vadd.f32 %v1357_v47, %v1342_v46 }
 0x635   : > { %1366 = vrot.lane.b32.xlu1 %v1361_v51, %s1915_s26  ;;  %s1851_s26 = scalar_lea.vmem %s1850_s25, 1536 }
 0x636   : > { %p1853_p1 = scmp.lt.s32.totalorder %s1851_s26, %s1845_s20 }
 0x638   : > { %p1854_p2 = por %p1853_p1, %p1852_p0 }
 0x63a   : > { %p1855_p3 = pnand %p1854_p2, %p1848_p13 }
 0x6a3   : > { %v1365_v54 = vpop.permute.xlu1 %1364 }
 0x6a4   : > { %v1371_v55 = vsel %vm1370_vm4, %v1151_v53, %v1365_v54 }
 0x6a5   : > { %v1374_v48 = vsel %vm1373_vm5, %v1371_v55, 0.0 }
 0x6a6   : > { %1378 = vst [vmem:[%s2327_s11 + $0x10] sm:$0xff] %v1374_v48 }
 0x6a7   : > { %v1367_v57 = vpop.permute.xlu1 %1366 }
 0x6a8   : > { %v1372_v49 = vsel %vm1370_vm4, %v1154_v56, %v1367_v57 }
 0x6a9   : > { %v1375_v45 = vsel %vm1373_vm5, %v1372_v49, 0.0 }
 0x6aa   : > { %1381 = vst [vmem:[%s2327_s11 + $0x28] sm:$0xff] %v1375_v45 }
 0x6ab   : > { %1858 = shalt.err (!%p1855_p3)
}
 0x6ac   : > { %s1859_s11 = scalar_lea.hbm %s2405_s12, 768  ;;  %s1863_s30 = scalar_lea.hbm %s2463_s10, 1536 }
 0x6ad   : > { %p1860_p4 = scmp.ne.s32.totalorder %s2405_s12, %s1859_s11  ;;  %p1864_p9 = scmp.lt.u32.totalorder %s2405_s12, %s2463_s10 }
 0x6ae   : > { %p1865_p10 = scmp.lt.u32.totalorder %s1863_s30, %s1859_s11  ;;  %p1867_p12 = scmp.lt.u32.totalorder %s1859_s11, %s2405_s12 }
 0x6af   : > { %p1861_p7 = pnand %p1860_p4, %p2012_p5 }
 0x6b0   : > { %p1866_p11 = por %p1865_p10, %p1864_p9 }
 0x6b1   : > { %p1862_p8 = pneg %p1861_p7 }
 0x6b2   : > { %p1868_p13 = por %p1867_p12, %p1866_p11 }
 0x6b4   : > { %p1869_p0 = pnand %p1868_p13, %p1862_p8 }
 0x6b6   : > { %1872 = shalt.err (!%p1869_p0)
}
 0x6b7   : > { %s1917_s20 = smov 384   ;;  %s1918_s25 = smov 24  }
 0x6b8   : > { %1679 = dma.vmem_to_hbm [thread:$0]  (%p2012_p5), %s2407_s29, 768, %s2405_s12, %s2412_s18, %s1917_s20, %s1917_s20, %s1918_s25  }
 0x6b9 PF: > { %p1685_p1 = scmp.ge.s32.totalorder %s1907_s16, 2  ;;  %s1412_s26 = sand.u32 1, %s1895_s13  }
 0x6ba   : > { %s1413_s11 = scalar_lea.sflag [#allocation3], %s1412_s26 }
 0x6bb   : > { %p1682_p2 = pnand %p1685_p1, %p2016_p6 }
 0x6bd   : > { %1890 = dma.done.wait (!%p1682_p2), %s1413_s11, 768  }
 0x6be   : > { %1892 = vsyncadd (!%p1682_p2), %s1413_s11, 4294966528  ;;  %p20_p3 = scmp.ge.s32.totalorder %s1999_s19, 4   ;;  %s2468_s13 = smov %s1899_s14 }
 0x6bf   : > { %s2469_s14 = smov %s1903_s15  ;;  %s2470_s15 = smov %s2010_s22 }
 0x6c0   : > { %s2471_s16 = smov %s1999_s19  ;;  %22 = sbr.rel (!%p20_p3) target bundleno = 3 (0x3), region = 95 }
 0x6c7   :  { %1418 = vsyncpa [#allocation3], 1 }
 0x6c8   :  { %1420 = vsyncpa [#allocation3 + $0x1], 1 }

</bundles_post_ra>
